<compile_context>
chip_gen: v7x
topology: tpu7x:2x2x1
jax: 0.10.0
libtpu: 0.0.40
codegen_flags: <defaults>
</compile_context>

<pallas_src>
import jax
import jax.numpy as jnp
from jax.experimental import pallas as pl
from jax.experimental.pallas import tpu as pltpu


def _round_up(x, m):
    return (x + m - 1) // m * m


def fused_doubleq_kernel(x_ref, w1t_ref, b1t_ref, w2t_ref, b2t_ref, out_ref):
    """One batch tile, transposed (lane-dense) orientation.

    x_ref:   (tb, in)      f32   (batch-major, straight from HBM)
    w1t_ref: (2H, in)      f32   packed [w1aᵀ ; w1bᵀ]
    b1t_ref: (2H, 1)       f32
    w2t_ref: (2out, 2H)    f32   block-diagonal [[w2aᵀ, 0], [0, w2bᵀ]]
    b2t_ref: (2out, 1)     f32
    out_ref: (2out, tb)          batch on the lane axis -> dense stores
    """
    xt = x_ref[...].T                                       # (in, tb)  XLU transpose
    # Layer 1, both Q-nets at once: (2H, in) @ (in, tb) -> (2H, tb), f32 acc.
    h = jnp.dot(w1t_ref[...], xt, preferred_element_type=jnp.float32)
    h = jnp.maximum(h + b1t_ref[...], 0.0)                  # bias + ReLU (VPU)
    # Layer 2: block-diagonal keeps the two Q-heads independent.
    q = jnp.dot(w2t_ref[...], h, preferred_element_type=jnp.float32) + b2t_ref[...]
    out_ref[...] = q.astype(out_ref.dtype)


def pack_double_q_params(params, dtype=jnp.float32):
    """Pack the two MLPs' weights once (plain XLA, outside the hot path).

    params = {"q1": (w1, b1, w2, b2), "q2": (...)}, w as (in, out), b as (1, out).
    Returns (w1t, b1t, w2t, b2t) in the transposed/fused layout the kernel uses.
    """
    w1a, b1a, w2a, b2a = params["q1"]
    w1b, b1b, w2b, b2b = params["q2"]
    hidden = w1a.shape[1]
    out_dim = w2a.shape[1]

    w1t = jnp.concatenate([w1a, w1b], axis=1).T.astype(dtype)        # (2H, in)
    b1t = jnp.concatenate([b1a, b1b], axis=1).T.astype(dtype)        # (2H, 1)
    zeros = jnp.zeros((hidden, out_dim), w2a.dtype)
    w2 = jnp.concatenate(
        [jnp.concatenate([w2a, zeros], axis=1),
         jnp.concatenate([zeros, w2b], axis=1)], axis=0)             # (2H, 2out)
    w2t = w2.T.astype(dtype)                                         # (2out, 2H)
    b2t = jnp.concatenate([b2a, b2b], axis=1).T.astype(dtype)        # (2out, 1)
    return w1t, b1t, w2t, b2t


def double_q_forward(x, packed, *, block_b=8192, min_grid_steps=1,
                     vmem_limit_bytes=48 * 1024 * 1024):
    """x: (B, in) f32. packed: output of pack_double_q_params.

    min_grid_steps: set to 2 on v7x so both TensorCores get a slice of the
    (parallel) batch grid; harmless (one extra ~0.35 us step) elsewhere.
    """
    B, in_dim = x.shape
    w1t, b1t, w2t, b2t = packed
    two_h = w1t.shape[0]
    out2 = w2t.shape[0]
    out_dim = out2 // 2

    # Batch tile: multiple of 128 so x-tiles are sublane-aligned and the
    # (2out, tb) output blocks are lane-dense; ragged last block is masked by
    # Pallas (no wrapper-side pad).
    tb = min(_round_up(B, 128), max(128, _round_up(block_b, 128)))
    if min_grid_steps > 1:
        tb = min(tb, max(128, _round_up(pl.cdiv(B, min_grid_steps), 128)))
    grid = (pl.cdiv(B, tb),)

    flops = 2 * B * (in_dim * two_h + two_h * out2)
    bytes_accessed = 4 * int(B * in_dim + B * out2
                             + w1t.size + b1t.size + w2t.size + b2t.size)

    qt = pl.pallas_call(
        fused_doubleq_kernel,
        out_shape=jax.ShapeDtypeStruct((out2, B), x.dtype),
        grid_spec=pltpu.PrefetchScalarGridSpec(
            num_scalar_prefetch=0,
            grid=grid,
            in_specs=[
                pl.BlockSpec((tb, in_dim), lambda i: (i, 0)),   # x: tiled over batch
                pl.BlockSpec(w1t.shape, lambda i: (0, 0)),      # weights stay resident
                pl.BlockSpec(b1t.shape, lambda i: (0, 0)),
                pl.BlockSpec(w2t.shape, lambda i: (0, 0)),
                pl.BlockSpec(b2t.shape, lambda i: (0, 0)),
            ],
            out_specs=pl.BlockSpec((out2, tb), lambda i: (0, i)),
        ),
        compiler_params=pltpu.CompilerParams(
            dimension_semantics=("parallel",),     # shard batch axis across TCs
            vmem_limit_bytes=vmem_limit_bytes),    # > v5e 16MiB default, < v7x 64MiB
        cost_estimate=pl.CostEstimate(
            flops=flops, transcendentals=0, bytes_accessed=bytes_accessed),
    )(x, w1t, b1t, w2t, b2t)

    # (2out, B) -> two (B, out) views; tiny transpose on the small output stream.
    return qt[:out_dim, :].T, qt[out_dim:, :].T


def init_mlp_params(key, input_dim, output_dim, hidden_dim, dtype=jnp.float32):
    k1, k2, k3, k4 = jax.random.split(key, 4)
    s1 = 1.0 / jnp.sqrt(input_dim)
    s2 = 1.0 / jnp.sqrt(hidden_dim)
    w1 = jax.random.uniform(k1, (input_dim, hidden_dim), dtype, -s1, s1)
    b1 = jax.random.uniform(k2, (1, hidden_dim), dtype, -s1, s1)
    w2 = jax.random.uniform(k3, (hidden_dim, output_dim), dtype, -s2, s2)
    b2 = jax.random.uniform(k4, (1, output_dim), dtype, -s2, s2)
    return (w1, b1, w2, b2)


def reference_forward(x, params):
    def mlp(x, p):
        w1, b1, w2, b2 = p
        h = jnp.maximum(x @ w1 + b1, 0.0)
        return h @ w2 + b2
    return mlp(x, params["q1"]), mlp(x, params["q2"])


if __name__ == "__main__":
    key = jax.random.PRNGKey(0)
    kx, kq1, kq2 = jax.random.split(key, 3)

    batch = 300         # ragged (not a multiple of the tile) to exercise masking
    input_dim = 16      # e.g. state_dim + action_dim
    hidden_dim = 32
    output_dim = 8

    x = jax.random.normal(kx, (batch, input_dim), jnp.float32)
    params = {
        "q1": init_mlp_params(kq1, input_dim, output_dim, hidden_dim),
        "q2": init_mlp_params(kq2, input_dim, output_dim, hidden_dim),
    }

    packed = pack_double_q_params(params)          # pack once, outside the hot path
    packed = jax.block_until_ready(packed)

    # Multi-step grid with a ragged last block (300 = 2*128 + 44).
    q1, q2 = double_q_forward(x, packed, block_b=128)
    # Default big-tile path, forced into >=2 steps (v7x-style megacore split).
    q1b, q2b = double_q_forward(x, packed, min_grid_steps=2)
    jax.block_until_ready((q1, q2, q1b, q2b))

    r1, r2 = reference_forward(x, params)
    for a, b in ((q1, r1), (q2, r2), (q1b, r1), (q2b, r2)):
        assert a.shape == b.shape
        assert jnp.allclose(a, b, atol=2e-2, rtol=2e-2), "mismatch vs reference"

    print("KERNEL_OK")
</pallas_src>

<mosaic_0001>
module attributes {stable_mosaic.version = 11 : i64} {
  func.func @fused_doubleq_kernel(%arg0: i32, %arg1: memref<128x16xf32, #tpu.memory_space<vmem>>, %arg2: memref<64x16xf32, #tpu.memory_space<vmem>>, %arg3: memref<64x1xf32, #tpu.memory_space<vmem>>, %arg4: memref<16x64xf32, #tpu.memory_space<vmem>>, %arg5: memref<16x1xf32, #tpu.memory_space<vmem>>, %arg6: memref<16x128xf32, #tpu.memory_space<vmem>>) attributes {dimension_semantics = [#tpu.dimension_semantics<parallel>], iteration_bounds = array<i64: 3>, scalar_prefetch = 0 : i64, scratch_operands = 0 : i64, tpu.core_type = #tpu.core_type<tc>, window_params = [{transform_indices = @transform_0, window_bounds = array<i64: 128, 16>}, {pipeline_mode = #tpu.pipeline_mode<synchronous>, transform_indices = @transform_1, window_bounds = array<i64: 64, 16>}, {pipeline_mode = #tpu.pipeline_mode<synchronous>, transform_indices = @transform_2, window_bounds = array<i64: 64, 1>}, {pipeline_mode = #tpu.pipeline_mode<synchronous>, transform_indices = @transform_3, window_bounds = array<i64: 16, 64>}, {pipeline_mode = #tpu.pipeline_mode<synchronous>, transform_indices = @transform_4, window_bounds = array<i64: 16, 1>}, {transform_indices = @transform_5, window_bounds = array<i64: 16, 128>}]} {
    %c0 = arith.constant 0 : index
    %c0_0 = arith.constant 0 : index
    %0 = vector.load %arg1[%c0, %c0_0] : memref<128x16xf32, #tpu.memory_space<vmem>>, vector<128x16xf32>
    %1 = tpu.transpose %0, [1, 0] : vector<128x16xf32> -> vector<16x128xf32>
    %c0_1 = arith.constant 0 : index
    %c0_2 = arith.constant 0 : index
    %2 = vector.load %arg2[%c0_1, %c0_2] : memref<64x16xf32, #tpu.memory_space<vmem>>, vector<64x16xf32>
    %cst = arith.constant dense<0.000000e+00> : vector<64x128xf32>
    %3 = tpu.matmul %2, %1, %cst {dimension_numbers = #tpu.dot_dimension_numbers<[1], [0], [0], [1], [0, 0, 1, 1], [], []>} : vector<64x16xf32>, vector<16x128xf32>, vector<64x128xf32> -> vector<64x128xf32>
    %c0_3 = arith.constant 0 : index
    %c0_4 = arith.constant 0 : index
    %4 = vector.load %arg3[%c0_3, %c0_4] : memref<64x1xf32, #tpu.memory_space<vmem>>, vector<64x1xf32>
    %5 = vector.broadcast %4 : vector<64x1xf32> to vector<64x128xf32>
    %6 = arith.addf %3, %5 : vector<64x128xf32>
    %cst_5 = arith.constant 0.000000e+00 : f32
    %7 = vector.broadcast %cst_5 : f32 to vector<64x128xf32>
    %8 = arith.maximumf %6, %7 : vector<64x128xf32>
    %c0_6 = arith.constant 0 : index
    %c0_7 = arith.constant 0 : index
    %9 = vector.load %arg4[%c0_6, %c0_7] : memref<16x64xf32, #tpu.memory_space<vmem>>, vector<16x64xf32>
    %cst_8 = arith.constant dense<0.000000e+00> : vector<16x128xf32>
    %10 = tpu.matmul %9, %8, %cst_8 {dimension_numbers = #tpu.dot_dimension_numbers<[1], [0], [0], [1], [0, 0, 1, 1], [], []>} : vector<16x64xf32>, vector<64x128xf32>, vector<16x128xf32> -> vector<16x128xf32>
    %c0_9 = arith.constant 0 : index
    %c0_10 = arith.constant 0 : index
    %11 = vector.load %arg5[%c0_9, %c0_10] : memref<16x1xf32, #tpu.memory_space<vmem>>, vector<16x1xf32>
    %12 = vector.broadcast %11 : vector<16x1xf32> to vector<16x128xf32>
    %13 = arith.addf %10, %12 : vector<16x128xf32>
    %c0_11 = arith.constant 0 : index
    %c0_12 = arith.constant 0 : index
    %14 = vector.load %arg6[%c0_11, %c0_12] : memref<16x128xf32, #tpu.memory_space<vmem>>, vector<16x128xf32>
    tpu.vector_store %arg6[%c0_11, %c0_12], %13 {strides = array<i32>} : memref<16x128xf32, #tpu.memory_space<vmem>>, vector<16x128xf32>,
    return
  }
  func.func @transform_0(%arg0: i32) -> (i32, i32) {
    %c0_i32 = arith.constant 0 : i32
    %c0_i32_0 = arith.constant 0 : i32
    return %arg0, %c0_i32 : i32, i32
  }
  func.func @transform_1(%arg0: i32) -> (i32, i32) {
    %c0_i32 = arith.constant 0 : i32
    %c0_i32_0 = arith.constant 0 : i32
    %c0_i32_1 = arith.constant 0 : i32
    return %c0_i32, %c0_i32_0 : i32, i32
  }
  func.func @transform_2(%arg0: i32) -> (i32, i32) {
    %c0_i32 = arith.constant 0 : i32
    %c0_i32_0 = arith.constant 0 : i32
    %c0_i32_1 = arith.constant 0 : i32
    return %c0_i32, %c0_i32_0 : i32, i32
  }
  func.func @transform_3(%arg0: i32) -> (i32, i32) {
    %c0_i32 = arith.constant 0 : i32
    %c0_i32_0 = arith.constant 0 : i32
    %c0_i32_1 = arith.constant 0 : i32
    return %c0_i32, %c0_i32_0 : i32, i32
  }
  func.func @transform_4(%arg0: i32) -> (i32, i32) {
    %c0_i32 = arith.constant 0 : i32
    %c0_i32_0 = arith.constant 0 : i32
    %c0_i32_1 = arith.constant 0 : i32
    return %c0_i32, %c0_i32_0 : i32, i32
  }
  func.func @transform_5(%arg0: i32) -> (i32, i32) {
    %c0_i32 = arith.constant 0 : i32
    %c0_i32_0 = arith.constant 0 : i32
    return %c0_i32, %arg0 : i32, i32
  }
}

</mosaic_0001>

<bundles_post_ra>
// kernel: tpu_custom_call.1
= control target key start
LH: loop header
LB: loop body
LE: loop exit
PB: predicated region body
PF: predicated region fallthrough
CT: control target
= control target key end

     0   :  { %10 = vsyncpa [#allocation3], 0  ;;  %s1246_s0 = inlined_call_operand.vmem [shape: f32[300,16], index: 0, kind: input, shape index: {}]   ;;  %s1247_s1 = inlined_call_operand.vmem [shape: f32[64,16], index: 1, kind: input, shape index: {}]   ;;  %s1248_s2 = inlined_call_operand.vmem [shape: f32[64,1], index: 2, kind: input, shape index: {}]   ;;  %s1249_s3 = inlined_call_operand.vmem [shape: f32[16,64], index: 3, kind: input, shape index: {}]   ;;  %s1250_s4 = inlined_call_operand.vmem [shape: f32[16,1], index: 4, kind: input, shape index: {}]   ;;  %s1251_s5 = inlined_call_operand.hbm [shape: f32[16,300], index: 5, kind: output, shape index: {}]  }
   0x1   :  { %12 = vsyncpa [#allocation3 + $0x1], 0  ;;  %s1018_s18 = smov 0   ;;  %s1020_s19 = smov 0  }
   0x2   :  { %s1022_s20 = smov 0   ;;  %s1024_s21 = smov 0  }
   0x3 LB: > { %s1039_s22 = sadd.s32 4294967295, %s981_s21   ;;  %s676_s23 = sadd.s32 4294967294, %s981_s21   ;;  %s981_s21 = sphi %s1024_s21, %s1259_s21   ;;  %s977_s20 = sphi %s1022_s20, %s1258_s20   ;;  %s973_s19 = sphi %s1020_s19, %s1257_s19   ;;  %s969_s18 = sphi %s1018_s18, %s1256_s18  }
   0x4   : > { %s1043_s24 = sadd.s32 1, %s981_s21   ;;  %s135_s25 = sadd.s32 1, %s977_s20 }
   0x5   : > { %s132_s26 = ssub.s32 %s981_s21, %s1043_s24  ;;  %p145_p0 = scmp.ne.s32.totalorder %s977_s20, %s973_s19 }
   0x6   : > { %p133_p1 = scmp.eq.s32.totalorder %s132_s26, 0  ;;  %p146_p2 = scmp.eq.s32.totalorder %s1039_s22, 2 }
   0x7   : > { %p151_p3 = scmp.ne.s32.totalorder %s973_s19, %s969_s18  ;;  %p152_p4 = scmp.eq.s32.totalorder %s676_s23, 2 }
   0x8   : > { %s1054_s27 = scalar_select %p133_p1, %s977_s20, %s135_s25  }
   0x9   : > { %p1056_p5 = por %p146_p2, %p145_p0  ;;  %p1060_p6 = por %p152_p4, %p151_p3 }
   0xa   : > { %p679_p7 = scmp.ge.s32.totalorder %s981_s21, 1  ;;  %p199_p8 = scmp.lt.s32.totalorder %s981_s21, 4 }
   0xc   : > { %p200_p9 = pnand %p679_p7, %p199_p8 }
   0xd   : > { %s681_s30 = sshll.u32 (!%p200_p9), %s1039_s22, 4  ;;  %vm317_vm0 = vcmask (!%p200_p9), 130048   ;;  %v261_v0 = vld [vmem:[%s1247_s1] sm:$0xff] (!%p200_p9)  ;;  %v983_v1 = vmov (!%p200_p9), 0   ;;  %v271_v3 = vld [vmem:[%s1248_s2 + $0x10] sm:$0xff] (!%p200_p9)  ;;  %v270_v4 = vld [vmem:[%s1248_s2 + $0x8] sm:$0xff] (!%p200_p9) }
   0xe   : > { %203 = sbr.rel (%p200_p9) target bundleno = 557 (0x22d), region = 40  ;;  %p236_p10 = scmp.lt.s32.totalorder (!%p200_p9), %s681_s30, 37  ;;  %779 = vmatprep.mubr.msk.f32.mxu0 (!%p200_p9), %vm317_vm0, %v261_v0  ;;  %917 = vset.pattern.permute.xlu0 (!%p200_p9), %v983_v1  ;;  %v269_v2 = vld [vmem:[%s1248_s2] sm:$0xff] (!%p200_p9)  ;;  %v272_v5 = vld [vmem:[%s1248_s2 + $0x18] sm:$0xff] (!%p200_p9)  ;;  %vm1090_vm1 = vmpackc.low (!%p200_p9), %vm317_vm0, %vm317_vm0  ;;  %vm517_vm2 = vcmask (!%p200_p9), 523264  }
   0xf   : > { %918 = vset.pattern.permute.xlu1 (!%p200_p9), %v983_v1  ;;  %279 = vperm.xlu0 (!%p200_p9), %917, %v269_v2   ;;  %v273_v13 = vld [vmem:[%s1248_s2 + $0x20] sm:$0xff] (!%p200_p9)  ;;  %v274_v14 = vld [vmem:[%s1248_s2 + $0x28] sm:$0xff] (!%p200_p9)  ;;  %v275_v17 = vld [vmem:[%s1248_s2 + $0x30] sm:$0xff] (!%p200_p9)  ;;  %s228_s23 = sand.u32 (!%p200_p9), 1, %s973_s19   ;;  %s710_s6 = sshll.u32 (!%p200_p9), %s1039_s22, 7 }
  0x10   : > { %289 = vperm.xlu1 (!%p200_p9), %918, %v271_v3   ;;  %v276_v18 = vld [vmem:[%s1248_s2 + $0x38] sm:$0xff] (!%p200_p9)  ;;  %v505_v20 = vld [vmem:[%s1250_s4] sm:$0xff] (!%p200_p9)  ;;  %v506_v21 = vld [vmem:[%s1250_s4 + $0x8] sm:$0xff] (!%p200_p9)  ;;  %s680_s26 = sshll.u32 (!%p200_p9), %s228_s23, 4  ;;  %s1203_s9 = scalar_lea.hbm (!%p200_p9), %s1251_s5, %s710_s6 }
  0x11   : > { %v262_v37 = vld [vmem:[%s1247_s1 + $0x8] sm:$0xff] (!%p200_p9)  ;;  %v263_v38 = vld [vmem:[%s1247_s1 + $0x10] sm:$0xff] (!%p200_p9)  ;;  %v264_v39 = vld [vmem:[%s1247_s1 + $0x18] sm:$0xff] (!%p200_p9)  ;;  %s1205_s10 = scalar_lea.sflag (!%p200_p9), [#allocation3], %s228_s23  ;;  %s984_s11 = smov (!%p200_p9), [#allocation2]  }
  0x12   : > { %v265_v40 = vld [vmem:[%s1247_s1 + $0x20] sm:$0xff] (!%p200_p9)  ;;  %v266_v41 = vld [vmem:[%s1247_s1 + $0x28] sm:$0xff] (!%p200_p9)  ;;  %v267_v42 = vld [vmem:[%s1247_s1 + $0x30] sm:$0xff] (!%p200_p9) }
  0x13   : > { %284 = vperm.xlu0 (!%p200_p9), %917, %v270_v4   ;;  %v268_v43 = vld [vmem:[%s1247_s1 + $0x38] sm:$0xff] (!%p200_p9)  ;;  %v503_v44 = vld [vmem:[%s1249_s3] sm:$0xff] (!%p200_p9) }
  0x14   : > { %294 = vperm.xlu1 (!%p200_p9), %918, %v272_v5   ;;  %807 = vmatprep.mubr.msk.f32.mxu1 (!%p200_p9), %vm517_vm2, %v503_v44 }
  0x15   : > { %s1261_s30 = smov (!%p236_p10, %s681_s30), 37 }
  0x16   : > { %s682_s12 = sshll.u32 %s1261_s30, 3 }
  0x17   : > { %s1086_s25 = scalar_lea.vmem %s1246_s0, %s682_s12  ;;  %299 = vperm.xlu0 %917, %v273_v13   ;;  %s923_s12 = sshll.u32 %s984_s11, 4  ;;  %s924_s12 = int_to_ptr.vmem [resolvable:$false] %s923_s12 }
  0x18   : > { %v245_v7 = vld [vmem:[%s1086_s25] sm:$0xff]  ;;  %v246_v8 = vld [vmem:[%s1086_s25 + $0x8] sm:$0xff]  ;;  %v247_v9 = vld [vmem:[%s1086_s25 + $0x10] sm:$0xff]  ;;  %304 = vperm.xlu1 %918, %v274_v14   ;;  %s925_s13 = scalar_lea.vmem %s924_s12, 512 }
  0x19   : > { %v810_v10 = vpack.c.bf16 %v246_v8, %v245_v7  ;;  %v248_v11 = vld [vmem:[%s1086_s25 + $0x18] sm:$0xff]  ;;  %v249_v15 = vld [vmem:[%s1086_s25 + $0x20] sm:$0xff]  ;;  %v250_v16 = vld [vmem:[%s1086_s25 + $0x28] sm:$0xff] }
  0x1a   : > { %v816_v12 = vpack.c.bf16 %v248_v11, %v247_v9  ;;  %v822_v19 = vpack.c.bf16 %v250_v16, %v249_v15  ;;  %v251_v22 = vld [vmem:[%s1086_s25 + $0x30] sm:$0xff]  ;;  %v252_v23 = vld [vmem:[%s1086_s25 + $0x38] sm:$0xff]  ;;  %v253_v25 = vld [vmem:[%s1086_s25 + $0x40] sm:$0xff] }
  0x1b   : > { %812 = vmatprep.subr.msk.bf16.mxu0 %vm1090_vm1, %v810_v10  ;;  %309 = vperm.xlu0 %917, %v275_v17   ;;  %v828_v24 = vpack.c.bf16 %v252_v23, %v251_v22  ;;  %v254_v26 = vld [vmem:[%s1086_s25 + $0x48] sm:$0xff]  ;;  %v255_v28 = vld [vmem:[%s1086_s25 + $0x50] sm:$0xff]  ;;  %v256_v29 = vld [vmem:[%s1086_s25 + $0x58] sm:$0xff] }
  0x1c   : > { %815 = vmatpush3.bf16.xpose.msk.msra.mxu0 %vm1090_vm1, %v810_v10  ;;  %314 = vperm.xlu1 %918, %v276_v18   ;;  %v834_v27 = vpack.c.bf16 %v254_v26, %v253_v25  ;;  %v840_v30 = vpack.c.bf16 %v256_v29, %v255_v28  ;;  %v257_v31 = vld [vmem:[%s1086_s25 + $0x60] sm:$0xff]  ;;  %v258_v32 = vld [vmem:[%s1086_s25 + $0x68] sm:$0xff]  ;;  %v259_v34 = vld [vmem:[%s1086_s25 + $0x70] sm:$0xff] }
  0x1d   : > { %818 = vmatprep.subr.msk.bf16.mxu0 %vm1090_vm1, %v816_v12  ;;  %v846_v33 = vpack.c.bf16 %v258_v32, %v257_v31  ;;  %v260_v35 = vld [vmem:[%s1086_s25 + $0x78] sm:$0xff]  ;;  %v504_v17 = vld [vmem:[%s1249_s3 + $0x8] sm:$0xff]  ;;  %s230_s25 = scalar_lea.vmem [#allocation2], %s680_s26 }
  0x1e   : > { %v852_v36 = vpack.c.bf16 %v260_v35, %v259_v34  ;;  %s614_s30 = sshll.u32 %s230_s25, 4  ;;  %s1198_s30 = int_to_ptr.vmem [resolvable:$true] %s614_s30 }
  0x1f   : > { %509 = vperm.xlu0 %917, %v505_v20   ;;  %s919_s22 = scalar_lea.vmem %s1198_s30, 256  ;;  %p926_p0 = scmp.lt.s32.totalorder %s1198_s30, %s924_s12 }
  0x20   : > { %514 = vperm.xlu1 %918, %v506_v21   ;;  %p920_p11 = scmp.ne.s32.totalorder %s1198_s30, %s919_s22  ;;  %p927_p1 = scmp.lt.s32.totalorder %s925_s13, %s919_s22 }
  0x22   : > { %p921_p12 = pnand %p920_p11, %p1056_p5  ;;  %p928_p2 = por %p927_p1, %p926_p0 }
  0x24   : > { %821 = vmatpush3.bf16.xpose.msk.msra.mxu0 %vm1090_vm1, %v816_v12  ;;  %p922_p13 = pneg %p921_p12 }
  0x25   : > { %824 = vmatprep.subr.msk.bf16.mxu0 %vm1090_vm1, %v822_v19 }
  0x26   : > { %p929_p3 = pnand %p928_p2, %p922_p13 }
  0x2c   : > { %827 = vmatpush3.bf16.xpose.msk.msra.mxu0 %vm1090_vm1, %v822_v19 }
  0x2d   : > { %830 = vmatprep.subr.msk.bf16.mxu0 %vm1090_vm1, %v828_v24 }
  0x34   : > { %833 = vmatpush3.bf16.xpose.msk.msra.mxu0 %vm1090_vm1, %v828_v24 }
  0x35   : > { %836 = vmatprep.subr.msk.bf16.mxu0 %vm1090_vm1, %v834_v27 }
  0x3c   : > { %839 = vmatpush3.bf16.xpose.msk.msra.mxu0 %vm1090_vm1, %v834_v27 }
  0x3d   : > { %842 = vmatprep.subr.msk.bf16.mxu0 %vm1090_vm1, %v840_v30 }
  0x44   : > { %845 = vmatpush3.bf16.xpose.msk.msra.mxu0 %vm1090_vm1, %v840_v30 }
  0x45   : > { %848 = vmatprep.subr.msk.bf16.mxu0 %vm1090_vm1, %v846_v33 }
  0x4c   : > { %851 = vmatpush3.bf16.xpose.msk.msra.mxu0 %vm1090_vm1, %v846_v33 }
  0x4d   : > { %854 = vmatprep.subr.msk.bf16.mxu0 %vm1090_vm1, %v852_v36 }
  0x54   : > { %857 = vmatpush3.bf16.xpose.msk.msra.mxu0 %vm1090_vm1, %v852_v36 }
  0x5b   : > { %780 = vmatmul.mubr.msk.f32.vlgmr.msra.gmra.mrb[0].mxu0 %vm317_vm0, %v262_v37 }
  0x5c   : > { %782 = vmatprep.mubr.msk.f32.mxu0 %vm317_vm0, %v263_v38 }
  0x5f   : > { %783 = vmatmul.mubr.msk.f32.gmra.mrb[2].mxu0 %vm317_vm0, %v264_v39 }
  0x60   : > { %785 = vmatprep.mubr.msk.f32.mxu0 %vm317_vm0, %v265_v40 }
  0x63   : > { %786 = vmatmul.mubr.msk.f32.gmra.mrb[4].mxu0 %vm317_vm0, %v266_v41 }
  0x64   : > { %788 = vmatprep.mubr.msk.f32.mxu0 %vm317_vm0, %v267_v42 }
  0x67   : > { %789 = vmatmul.mubr.msk.f32.gmra.mrb[6].mxu0 %vm317_vm0, %v268_v43 }
  0x8e   : > { %v280_v45 = vpop.permute.xlu0 %279 }
  0x8f   : > { %v290_v46 = vpop.permute.xlu1 %289 }
  0x92   : > { %v285_v47 = vpop.permute.xlu0 %284 }
  0x93   : > { %v295_v48 = vpop.permute.xlu1 %294 }
  0x96   : > { %v300_v61 = vpop.permute.xlu0 %299 }
  0x97   : > { %v305_v58 = vpop.permute.xlu1 %304 }
  0x9a   : > { %v310_v9 = vpop.permute.xlu0 %309 }
  0x9b   : > { %v315_v6 = vpop.permute.xlu1 %314 }
  0x9e   : > { %v510_v20 = vpop.permute.xlu0 %509 }
  0x9f   : > { %v515_v18 = vpop.permute.xlu1 %514 }
 0x12e   : > { %v781_v49 = vpop.f32.mrb[0].mxu0 }
 0x12f   : > { %v462_v50 = vadd.f32 %v781_v49, %v285_v47  ;;  %v456_v51 = vpop.f32.mrb[1].mxu0 }
 0x130   : > { %v457_v52 = vadd.f32 %v456_v51, %v280_v45 }
 0x131   : > { %v496_v53 = vmax.f32 %v462_v50, 0.0 }
 0x132   : > { %v495_v54 = vmax.f32 %v457_v52, 0.0  ;;  %v784_v55 = vpop.f32.mrb[2].mxu0 }
 0x133   : > { %v472_v56 = vadd.f32 %v784_v55, %v295_v48  ;;  %v466_v57 = vpop.f32.mrb[3].mxu0 }
 0x134   : > { %v467_v59 = vadd.f32 %v466_v57, %v290_v46  ;;  %v858_v60 = vpack.c.bf16 %v496_v53, %v495_v54 }
 0x135   : > { %v498_v62 = vmax.f32 %v472_v56, 0.0 }
 0x136   : > { %v497_v63 = vmax.f32 %v467_v59, 0.0  ;;  %v787_v0 = vpop.f32.mrb[4].mxu0  ;;  %859 = vmatprep.subr.bf16.mxu1 %v858_v60 }
 0x137   : > { %v482_v1 = vadd.f32 %v787_v0, %v305_v58  ;;  %v476_v2 = vpop.f32.mrb[5].mxu0  ;;  %861 = vmatpush3.bf16.msra.mxu1 %v858_v60 }
 0x138   : > { %v862_v3 = vpack.c.bf16 %v498_v62, %v497_v63  ;;  %v477_v4 = vadd.f32 %v476_v2, %v300_v61 }
 0x139   : > { %v500_v5 = vmax.f32 %v482_v1, 0.0 }
 0x13a   : > { %v499_v7 = vmax.f32 %v477_v4, 0.0  ;;  %v790_v8 = vpop.f32.mrb[6].mxu0  ;;  %863 = vmatprep.subr.bf16.mxu1 %v862_v3 }
 0x13b   : > { %v492_v10 = vadd.f32 %v790_v8, %v315_v6  ;;  %v486_v11 = vpop.f32.mrb[7].mxu0  ;;  %865 = vmatpush3.bf16.msra.mxu1 %v862_v3 }
 0x13c   : > { %v866_v12 = vpack.c.bf16 %v500_v5, %v499_v7  ;;  %v487_v13 = vadd.f32 %v486_v11, %v310_v9 }
 0x13d   : > { %v502_v14 = vmax.f32 %v492_v10, 0.0 }
 0x13e   : > { %v501_v15 = vmax.f32 %v487_v13, 0.0  ;;  %867 = vmatprep.subr.bf16.mxu1 %v866_v12 }
 0x13f   : > { %869 = vmatpush3.bf16.msra.mxu1 %v866_v12 }
 0x140   : > { %v870_v16 = vpack.c.bf16 %v502_v14, %v501_v15 }
 0x142   : > { %871 = vmatprep.subr.bf16.mxu1 %v870_v16 }
 0x143   : > { %873 = vmatpush3.bf16.msra.mxu1 %v870_v16 }
 0x146   : > { %808 = vmatmul.mubr.msk.f32.vlgmr.msra.gmra.mrb[0].mxu1 %vm517_vm2, %v504_v17 }
 0x219   : > { %v809_v19 = vpop.f32.mrb[0].mxu1 }
 0x21a   : > { %v596_v21 = vadd.f32 %v809_v19, %v515_v18  ;;  %v590_v22 = vpop.f32.mrb[1].mxu1 }
 0x21b   : > { %v591_v23 = vadd.f32 %v590_v22, %v510_v20 }
 0x21c   : > { %600 = vst [vmem:[%s230_s25 + $0x8] sm:$0xff] %v596_v21 }
 0x21d   : > { %599 = vst [vmem:[%s230_s25] sm:$0xff] %v591_v23 }
 0x21e   : > { %932 = shalt.err (!%p929_p3)
}
 0x21f   : > { %s933_s14 = scalar_lea.hbm %s1203_s9, 256  ;;  %s937_s17 = scalar_lea.hbm %s1251_s5, 768 }
 0x220   : > { %p934_p4 = scmp.ne.s32.totalorder %s1203_s9, %s933_s14  ;;  %p938_p9 = scmp.lt.u32.totalorder %s1203_s9, %s1251_s5 }
 0x221   : > { %p939_p10 = scmp.lt.u32.totalorder %s937_s17, %s933_s14  ;;  %p941_p12 = scmp.lt.u32.totalorder %s933_s14, %s1203_s9 }
 0x222   : > { %p935_p7 = pnand %p934_p4, %p1056_p5 }
 0x223   : > { %p940_p11 = por %p939_p10, %p938_p9 }
 0x224   : > { %p936_p8 = pneg %p935_p7 }
 0x225   : > { %p942_p13 = por %p941_p12, %p940_p11 }
 0x227   : > { %p943_p0 = pnand %p942_p13, %p936_p8 }
 0x229   : > { %946 = shalt.err (!%p943_p0)
}
 0x22a   : > { %s985_s25 = smov 128   ;;  %s986_s6 = smov 384  }
 0x22b   : > { %s987_s7 = smov 8  }
 0x22c   : > { %874 = dma.vmem_to_hbm [thread:$0]  (%p1056_p5), %s1198_s30, 256, %s1203_s9, %s1205_s10, %s985_s25, %s986_s6, %s987_s7  }
 0x22d PF: > { %p880_p1 = scmp.ge.s32.totalorder %s981_s21, 2  ;;  %s629_s8 = sand.u32 1, %s969_s18  }
 0x22e   : > { %s630_s22 = scalar_lea.sflag [#allocation3], %s629_s8 }
 0x22f   : > { %p877_p2 = pnand %p880_p1, %p1060_p6 }
 0x231   : > { %964 = dma.done.wait (!%p877_p2), %s630_s22, 256  }
 0x232   : > { %966 = vsyncadd (!%p877_p2), %s630_s22, 4294967040  ;;  %p15_p3 = scmp.ge.s32.totalorder %s1043_s24, 5   ;;  %s1256_s18 = smov %s973_s19 }
 0x233   : > { %s1257_s19 = smov %s977_s20  ;;  %s1258_s20 = smov %s1054_s27 }
 0x234   : > { %s1259_s21 = smov %s1043_s24  ;;  %17 = sbr.rel (!%p15_p3) target bundleno = 3 (0x3), region = 75 }
 0x23b   :  { %635 = vsyncpa [#allocation3], 1 }
 0x23c   :  { %637 = vsyncpa [#allocation3 + $0x1], 1 }

</bundles_post_ra>
